<compile_context>
chip_gen: v5e
topology: v5e:2x2
jax: 0.10.0
libtpu: 0.0.40
codegen_flags: <defaults>
</compile_context>

<pallas_src>
import jax
import jax.numpy as jnp
from jax.experimental import pallas as pl
from jax.experimental.pallas import tpu as pltpu


def ngram_kernel(ids_ref, emb_ref, w1_ref, b1_ref, w2_ref, b2_ref, out_ref):
    ids = ids_ref[...]                                    # (TB, C) int32
    table = emb_ref[...]                                  # (V, D) bf16, VMEM-resident
    tb, ctx = ids.shape
    vocab, _ = table.shape
    cdt = table.dtype                                     # matmul compute dtype (bf16)

    # Fused embedding gather + layer1: for each context position c, build an
    # exact one-hot row selector (exactly one nonzero per row) and run it
    # through the MXU, then immediately contract with the matching W1 slice.
    pos_iota = jax.lax.broadcasted_iota(jnp.int32, (tb, vocab), 1)   # hoisted once
    h = b1_ref[...]                                       # (1, H) f32, broadcasts below
    for c in range(ctx):                                  # C is tiny & static -> unrolled
        onehot = (ids[:, c:c + 1] == pos_iota).astype(cdt)                    # (TB, V)
        emb_c = jnp.dot(onehot, table, preferred_element_type=jnp.float32)    # (TB, D) exact gather
        h = h + jnp.dot(emb_c.astype(cdt), w1_ref[c],                         # (TB, H)
                        preferred_element_type=jnp.float32)

    # Layer 2 (no activation in the reference module between the Linears).
    logits = jnp.dot(h.astype(w2_ref.dtype), w2_ref[...],
                     preferred_element_type=jnp.float32) + b2_ref[...]        # (TB, V) f32

    # Numerically stable log_softmax, kept in f32 (epilogue).
    m = jnp.max(logits, axis=-1, keepdims=True)
    shifted = logits - m
    lse = jnp.log(jnp.sum(jnp.exp(shifted), axis=-1, keepdims=True))
    out_ref[...] = (shifted - lse).astype(out_ref.dtype)


def _round_up(x, m):
    return (x + m - 1) // m * m


def ngram_forward(x_ids, emb_table, w1, b1, w2, b2, *,
                  block_b=128, compute_dtype=jnp.bfloat16):
    """x_ids: (B, context_size) int ids.  Returns (B, vocab) float32 log-probs.

    Weights are stored pre-transposed vs. PyTorch: w1 (C*D, H), w2 (H, V).
    """
    B, C = x_ids.shape
    V, D = emb_table.shape
    in_dim, H = w1.shape
    assert in_dim == C * D and w2.shape == (H, V)

    # bf16 matmul operands, f32 accumulation in-kernel.  The one-hot gather on a
    # bf16 table is still exact (one nonzero per row) and matches the previous
    # numerics (the embedding was cast to bf16 before layer1 anyway).
    table = jnp.asarray(emb_table, compute_dtype)
    w1c = jnp.asarray(w1, compute_dtype).reshape(C, D, H)   # per-position slices
    w2c = jnp.asarray(w2, compute_dtype)
    b1r = jnp.asarray(b1, jnp.float32).reshape(1, H)
    b2r = jnp.asarray(b2, jnp.float32).reshape(1, V)

    # Batch tiling: pad B up to a multiple of the batch tile (min 8 sublanes).
    tb = min(block_b, _round_up(B, 8))
    Bp = _round_up(B, tb)
    ids = x_ids.astype(jnp.int32)
    if Bp != B:
        ids = jnp.pad(ids, ((0, Bp - B), (0, 0)))
    grid = (Bp // tb,)

    flops = 2 * Bp * (C * V * D + C * D * H + H * V)
    bytes_accessed = (ids.size * 4 + table.size * table.dtype.itemsize
                      + w1c.size * w1c.dtype.itemsize + w2c.size * w2c.dtype.itemsize
                      + (H + V) * 4 + Bp * V * 4)
    cost = pl.CostEstimate(flops=flops,
                           transcendentals=Bp * (V + 1),   # exp per logit + log per row
                           bytes_accessed=bytes_accessed)

    out = pl.pallas_call(
        ngram_kernel,
        out_shape=jax.ShapeDtypeStruct((Bp, V), jnp.float32),
        grid=grid,
        in_specs=[
            pl.BlockSpec((tb, C), lambda i: (i, 0)),        # token ids, per batch tile
            pl.BlockSpec((V, D), lambda i: (0, 0)),         # embedding table (resident)
            pl.BlockSpec((C, D, H), lambda i: (0, 0, 0)),   # W1 as (C, D, H) (resident)
            pl.BlockSpec((1, H), lambda i: (0, 0)),         # b1
            pl.BlockSpec((H, V), lambda i: (0, 0)),         # W2 (resident)
            pl.BlockSpec((1, V), lambda i: (0, 0)),         # b2
        ],
        out_specs=pl.BlockSpec((tb, V), lambda i: (i, 0)),
        compiler_params=pltpu.CompilerParams(
            dimension_semantics=("parallel",)),             # batch axis: megacore/TC shard
        cost_estimate=cost,
    )(ids, table, w1c, b1r, w2c, b2r)
    # TODO(synk): for vocab >> a few K, tile W2/logits over V with an online
    # logsumexp (flash-softmax style) instead of a full (TB, V) logits tile.
    return out[:B]


if __name__ == "__main__":
    # Module hyper-parameters (small, TPU-tile friendly).
    vocab_size = 256
    context_size = 4
    n_dim = 32
    hidden = 128            # nn.Linear(context_size * n_dim, 128)
    batch = 8

    key = jax.random.PRNGKey(0)
    k_emb, k_w1, k_b1, k_w2, k_b2, k_x = jax.random.split(key, 6)

    # Deterministic synthetic parameters (PyTorch shapes, stored transposed).
    emb_table = jax.random.normal(k_emb, (vocab_size, n_dim), jnp.float32)
    w1 = jax.random.normal(k_w1, (context_size * n_dim, hidden), jnp.float32) * 0.05
    b1 = jax.random.normal(k_b1, (1, hidden), jnp.float32) * 0.05
    w2 = jax.random.normal(k_w2, (hidden, vocab_size), jnp.float32) * 0.05
    b2 = jax.random.normal(k_b2, (1, vocab_size), jnp.float32) * 0.05

    x_ids = jax.random.randint(k_x, (batch, context_size), 0, vocab_size, jnp.int32)

    out = jax.block_until_ready(ngram_forward(x_ids, emb_table, w1, b1, w2, b2))

    # Pure-JAX f32 reference (matches the PyTorch forward: embedding -> flatten ->
    # Linear -> Linear (no activation) -> log_softmax along dim=1).
    emb_flat = jnp.take(emb_table, x_ids.reshape(-1), axis=0).reshape(batch, -1)
    logits = (emb_flat @ w1 + b1) @ w2 + b2
    ref = jax.nn.log_softmax(logits, axis=-1)

    assert out.shape == (batch, vocab_size)
    # bf16 matmuls with f32 accumulation -> slightly loosened tolerance vs f32 ref.
    max_err = float(jnp.max(jnp.abs(out - ref)))
    assert jnp.allclose(out, ref, atol=2e-2, rtol=2e-2), max_err

    print("KERNEL_OK")
</pallas_src>

<mosaic_0001>
module attributes {stable_mosaic.version = 11 : i64} {
  func.func @ngram_kernel(%arg0: i32, %arg1: memref<8x4xi32, #tpu.memory_space<vmem>>, %arg2: memref<256x32xbf16, #tpu.memory_space<vmem>>, %arg3: memref<4x32x128xbf16, #tpu.memory_space<vmem>>, %arg4: memref<1x128xf32, #tpu.memory_space<vmem>>, %arg5: memref<128x256xbf16, #tpu.memory_space<vmem>>, %arg6: memref<1x256xf32, #tpu.memory_space<vmem>>, %arg7: memref<8x256xf32, #tpu.memory_space<vmem>>) attributes {dimension_semantics = [#tpu.dimension_semantics<parallel>], iteration_bounds = array<i64: 1>, scalar_prefetch = 0 : i64, scratch_operands = 0 : i64, tpu.core_type = #tpu.core_type<tc>, window_params = [{transform_indices = @transform_0, window_bounds = array<i64: 8, 4>}, {pipeline_mode = #tpu.pipeline_mode<synchronous>, transform_indices = @transform_1, window_bounds = array<i64: 256, 32>}, {pipeline_mode = #tpu.pipeline_mode<synchronous>, transform_indices = @transform_2, window_bounds = array<i64: 4, 32, 128>}, {pipeline_mode = #tpu.pipeline_mode<synchronous>, transform_indices = @transform_3, window_bounds = array<i64: 1, 128>}, {pipeline_mode = #tpu.pipeline_mode<synchronous>, transform_indices = @transform_4, window_bounds = array<i64: 128, 256>}, {pipeline_mode = #tpu.pipeline_mode<synchronous>, transform_indices = @transform_5, window_bounds = array<i64: 1, 256>}, {transform_indices = @transform_6, window_bounds = array<i64: 8, 256>}]} {
    %c0 = arith.constant 0 : index
    %c0_0 = arith.constant 0 : index
    %0 = vector.load %arg1[%c0, %c0_0] : memref<8x4xi32, #tpu.memory_space<vmem>>, vector<8x4xi32>
    %c0_1 = arith.constant 0 : index
    %c0_2 = arith.constant 0 : index
    %1 = vector.load %arg2[%c0_1, %c0_2] : memref<256x32xbf16, #tpu.memory_space<vmem>>, vector<256x32xbf16>
    %2 = tpu.iota {dimensions = array<i32: 1>} : vector<8x256xi32>
    %c0_3 = arith.constant 0 : index
    %c0_4 = arith.constant 0 : index
    %3 = vector.load %arg4[%c0_3, %c0_4] : memref<1x128xf32, #tpu.memory_space<vmem>>, vector<1x128xf32>
    %4 = vector.extract_strided_slice %0 {offsets = [0, 0], sizes = [8, 1], strides = [1, 1]} : vector<8x4xi32> to vector<8x1xi32>
    %5 = vector.broadcast %4 : vector<8x1xi32> to vector<8x256xi32>
    %6 = arith.cmpi eq, %5, %2 : vector<8x256xi32>
    %7 = arith.extui %6 : vector<8x256xi1> to vector<8x256xi32>
    %8 = arith.sitofp %7 : vector<8x256xi32> to vector<8x256xf32>
    %9 = arith.truncf %8 : vector<8x256xf32> to vector<8x256xbf16>
    %cst = arith.constant dense<0.000000e+00> : vector<8x32xf32>
    %10 = tpu.matmul %9, %1, %cst {dimension_numbers = #tpu.dot_dimension_numbers<[1], [0], [0], [1], [0, 0, 1, 1], [], []>} : vector<8x256xbf16>, vector<256x32xbf16>, vector<8x32xf32> -> vector<8x32xf32>
    %11 = arith.truncf %10 : vector<8x32xf32> to vector<8x32xbf16>
    %c0_5 = arith.constant 0 : index
    %c0_6 = arith.constant 0 : index
    %c0_7 = arith.constant 0 : index
    %12 = vector.load %arg3[%c0_5, %c0_6, %c0_7] : memref<4x32x128xbf16, #tpu.memory_space<vmem>>, vector<1x32x128xbf16>
    %13 = vector.shape_cast %12 : vector<1x32x128xbf16> to vector<32x128xbf16>
    %cst_8 = arith.constant dense<0.000000e+00> : vector<8x128xf32>
    %14 = tpu.matmul %11, %13, %cst_8 {dimension_numbers = #tpu.dot_dimension_numbers<[1], [0], [0], [1], [0, 0, 1, 1], [], []>} : vector<8x32xbf16>, vector<32x128xbf16>, vector<8x128xf32> -> vector<8x128xf32>
    %15 = vector.broadcast %3 : vector<1x128xf32> to vector<8x128xf32>
    %16 = arith.addf %15, %14 : vector<8x128xf32>
    %17 = vector.extract_strided_slice %0 {offsets = [0, 1], sizes = [8, 1], strides = [1, 1]} : vector<8x4xi32> to vector<8x1xi32>
    %18 = vector.broadcast %17 : vector<8x1xi32> to vector<8x256xi32>
    %19 = arith.cmpi eq, %18, %2 : vector<8x256xi32>
    %20 = arith.extui %19 : vector<8x256xi1> to vector<8x256xi32>
    %21 = arith.sitofp %20 : vector<8x256xi32> to vector<8x256xf32>
    %22 = arith.truncf %21 : vector<8x256xf32> to vector<8x256xbf16>
    %cst_9 = arith.constant dense<0.000000e+00> : vector<8x32xf32>
    %23 = tpu.matmul %22, %1, %cst_9 {dimension_numbers = #tpu.dot_dimension_numbers<[1], [0], [0], [1], [0, 0, 1, 1], [], []>} : vector<8x256xbf16>, vector<256x32xbf16>, vector<8x32xf32> -> vector<8x32xf32>
    %24 = arith.truncf %23 : vector<8x32xf32> to vector<8x32xbf16>
    %c1 = arith.constant 1 : index
    %c0_10 = arith.constant 0 : index
    %c0_11 = arith.constant 0 : index
    %25 = vector.load %arg3[%c1, %c0_10, %c0_11] : memref<4x32x128xbf16, #tpu.memory_space<vmem>>, vector<1x32x128xbf16>
    %26 = vector.shape_cast %25 : vector<1x32x128xbf16> to vector<32x128xbf16>
    %cst_12 = arith.constant dense<0.000000e+00> : vector<8x128xf32>
    %27 = tpu.matmul %24, %26, %cst_12 {dimension_numbers = #tpu.dot_dimension_numbers<[1], [0], [0], [1], [0, 0, 1, 1], [], []>} : vector<8x32xbf16>, vector<32x128xbf16>, vector<8x128xf32> -> vector<8x128xf32>
    %28 = arith.addf %16, %27 : vector<8x128xf32>
    %29 = vector.extract_strided_slice %0 {offsets = [0, 2], sizes = [8, 1], strides = [1, 1]} : vector<8x4xi32> to vector<8x1xi32>
    %30 = vector.broadcast %29 : vector<8x1xi32> to vector<8x256xi32>
    %31 = arith.cmpi eq, %30, %2 : vector<8x256xi32>
    %32 = arith.extui %31 : vector<8x256xi1> to vector<8x256xi32>
    %33 = arith.sitofp %32 : vector<8x256xi32> to vector<8x256xf32>
    %34 = arith.truncf %33 : vector<8x256xf32> to vector<8x256xbf16>
    %cst_13 = arith.constant dense<0.000000e+00> : vector<8x32xf32>
    %35 = tpu.matmul %34, %1, %cst_13 {dimension_numbers = #tpu.dot_dimension_numbers<[1], [0], [0], [1], [0, 0, 1, 1], [], []>} : vector<8x256xbf16>, vector<256x32xbf16>, vector<8x32xf32> -> vector<8x32xf32>
    %36 = arith.truncf %35 : vector<8x32xf32> to vector<8x32xbf16>
    %c2 = arith.constant 2 : index
    %c0_14 = arith.constant 0 : index
    %c0_15 = arith.constant 0 : index
    %37 = vector.load %arg3[%c2, %c0_14, %c0_15] : memref<4x32x128xbf16, #tpu.memory_space<vmem>>, vector<1x32x128xbf16>
    %38 = vector.shape_cast %37 : vector<1x32x128xbf16> to vector<32x128xbf16>
    %cst_16 = arith.constant dense<0.000000e+00> : vector<8x128xf32>
    %39 = tpu.matmul %36, %38, %cst_16 {dimension_numbers = #tpu.dot_dimension_numbers<[1], [0], [0], [1], [0, 0, 1, 1], [], []>} : vector<8x32xbf16>, vector<32x128xbf16>, vector<8x128xf32> -> vector<8x128xf32>
    %40 = arith.addf %28, %39 : vector<8x128xf32>
    %41 = vector.extract_strided_slice %0 {offsets = [0, 3], sizes = [8, 1], strides = [1, 1]} : vector<8x4xi32> to vector<8x1xi32>
    %42 = vector.broadcast %41 : vector<8x1xi32> to vector<8x256xi32>
    %43 = arith.cmpi eq, %42, %2 : vector<8x256xi32>
    %44 = arith.extui %43 : vector<8x256xi1> to vector<8x256xi32>
    %45 = arith.sitofp %44 : vector<8x256xi32> to vector<8x256xf32>
    %46 = arith.truncf %45 : vector<8x256xf32> to vector<8x256xbf16>
    %cst_17 = arith.constant dense<0.000000e+00> : vector<8x32xf32>
    %47 = tpu.matmul %46, %1, %cst_17 {dimension_numbers = #tpu.dot_dimension_numbers<[1], [0], [0], [1], [0, 0, 1, 1], [], []>} : vector<8x256xbf16>, vector<256x32xbf16>, vector<8x32xf32> -> vector<8x32xf32>
    %48 = arith.truncf %47 : vector<8x32xf32> to vector<8x32xbf16>
    %c3 = arith.constant 3 : index
    %c0_18 = arith.constant 0 : index
    %c0_19 = arith.constant 0 : index
    %49 = vector.load %arg3[%c3, %c0_18, %c0_19] : memref<4x32x128xbf16, #tpu.memory_space<vmem>>, vector<1x32x128xbf16>
    %50 = vector.shape_cast %49 : vector<1x32x128xbf16> to vector<32x128xbf16>
    %cst_20 = arith.constant dense<0.000000e+00> : vector<8x128xf32>
    %51 = tpu.matmul %48, %50, %cst_20 {dimension_numbers = #tpu.dot_dimension_numbers<[1], [0], [0], [1], [0, 0, 1, 1], [], []>} : vector<8x32xbf16>, vector<32x128xbf16>, vector<8x128xf32> -> vector<8x128xf32>
    %52 = arith.addf %40, %51 : vector<8x128xf32>
    %53 = arith.truncf %52 : vector<8x128xf32> to vector<8x128xbf16>
    %c0_21 = arith.constant 0 : index
    %c0_22 = arith.constant 0 : index
    %54 = vector.load %arg5[%c0_21, %c0_22] : memref<128x256xbf16, #tpu.memory_space<vmem>>, vector<128x256xbf16>
    %cst_23 = arith.constant dense<0.000000e+00> : vector<8x256xf32>
    %55 = tpu.matmul %53, %54, %cst_23 {dimension_numbers = #tpu.dot_dimension_numbers<[1], [0], [0], [1], [0, 0, 1, 1], [], []>} : vector<8x128xbf16>, vector<128x256xbf16>, vector<8x256xf32> -> vector<8x256xf32>
    %c0_24 = arith.constant 0 : index
    %c0_25 = arith.constant 0 : index
    %56 = vector.load %arg6[%c0_24, %c0_25] : memref<1x256xf32, #tpu.memory_space<vmem>>, vector<1x256xf32>
    %57 = vector.broadcast %56 : vector<1x256xf32> to vector<8x256xf32>
    %58 = arith.addf %55, %57 : vector<8x256xf32>
    %cst_26 = arith.constant dense<0xFF800000> : vector<8xf32>
    %59 = vector.multi_reduction <maximumf>, %58, %cst_26 [1] : vector<8x256xf32> to vector<8xf32>
    %60 = vector.shape_cast %59 : vector<8xf32> to vector<8x1xf32>
    %61 = vector.broadcast %60 : vector<8x1xf32> to vector<8x256xf32>
    %62 = arith.subf %58, %61 : vector<8x256xf32>
    %63 = math.exp %62 : vector<8x256xf32>
    %cst_27 = arith.constant dense<0.000000e+00> : vector<8xf32>
    %64 = vector.multi_reduction <add>, %63, %cst_27 [1] : vector<8x256xf32> to vector<8xf32>
    %65 = vector.shape_cast %64 : vector<8xf32> to vector<8x1xf32>
    %66 = math.log %65 : vector<8x1xf32>
    %67 = vector.broadcast %66 : vector<8x1xf32> to vector<8x256xf32>
    %68 = arith.subf %62, %67 : vector<8x256xf32>
    %c0_28 = arith.constant 0 : index
    %c0_29 = arith.constant 0 : index
    %69 = vector.load %arg7[%c0_28, %c0_29] : memref<8x256xf32, #tpu.memory_space<vmem>>, vector<8x256xf32>
    tpu.vector_store %arg7[%c0_28, %c0_29], %68 {strides = array<i32>} : memref<8x256xf32, #tpu.memory_space<vmem>>, vector<8x256xf32>,
    return
  }
  func.func @transform_0(%arg0: i32) -> (i32, i32) {
    %c0_i32 = arith.constant 0 : i32
    %c0_i32_0 = arith.constant 0 : i32
    return %arg0, %c0_i32 : i32, i32
  }
  func.func @transform_1(%arg0: i32) -> (i32, i32) {
    %c0_i32 = arith.constant 0 : i32
    %c0_i32_0 = arith.constant 0 : i32
    %c0_i32_1 = arith.constant 0 : i32
    return %c0_i32, %c0_i32_0 : i32, i32
  }
  func.func @transform_2(%arg0: i32) -> (i32, i32, i32) {
    %c0_i32 = arith.constant 0 : i32
    %c0_i32_0 = arith.constant 0 : i32
    %c0_i32_1 = arith.constant 0 : i32
    %c0_i32_2 = arith.constant 0 : i32
    return %c0_i32, %c0_i32_0, %c0_i32_1 : i32, i32, i32
  }
  func.func @transform_3(%arg0: i32) -> (i32, i32) {
    %c0_i32 = arith.constant 0 : i32
    %c0_i32_0 = arith.constant 0 : i32
    %c0_i32_1 = arith.constant 0 : i32
    return %c0_i32, %c0_i32_0 : i32, i32
  }
  func.func @transform_4(%arg0: i32) -> (i32, i32) {
    %c0_i32 = arith.constant 0 : i32
    %c0_i32_0 = arith.constant 0 : i32
    %c0_i32_1 = arith.constant 0 : i32
    return %c0_i32, %c0_i32_0 : i32, i32
  }
  func.func @transform_5(%arg0: i32) -> (i32, i32) {
    %c0_i32 = arith.constant 0 : i32
    %c0_i32_0 = arith.constant 0 : i32
    %c0_i32_1 = arith.constant 0 : i32
    return %c0_i32, %c0_i32_0 : i32, i32
  }
  func.func @transform_6(%arg0: i32) -> (i32, i32) {
    %c0_i32 = arith.constant 0 : i32
    %c0_i32_0 = arith.constant 0 : i32
    return %arg0, %c0_i32 : i32, i32
  }
}

</mosaic_0001>

<bundles_post_ra>
// kernel: tpu_custom_call.1
= control target key start
LH: loop header
LB: loop body
LE: loop exit
PB: predicated region body
PF: predicated region fallthrough
CT: control target
= control target key end

     0   :  { %11 = vsyncpa [#allocation3], 0  ;;  %s1263_s0 = inlined_call_operand.vmem [shape: s32[8,4], index: 0, kind: input, shape index: {}]   ;;  %s1264_s1 = inlined_call_operand.vmem [shape: bf16[256,32], index: 1, kind: input, shape index: {}]   ;;  %s1265_s2 = inlined_call_operand.hbm [shape: bf16[4,32,128], index: 2, kind: input, shape index: {}]   ;;  %s1266_s3 = inlined_call_operand.vmem [shape: f32[1,128], index: 3, kind: input, shape index: {}]   ;;  %s1267_s4 = inlined_call_operand.vmem [shape: bf16[128,256], index: 4, kind: input, shape index: {}]   ;;  %s1268_s5 = inlined_call_operand.vmem [shape: f32[1,256], index: 5, kind: input, shape index: {}]   ;;  %s1269_s6 = inlined_call_operand.hbm [shape: f32[8,256], index: 6, kind: output, shape index: {}]  }
   0x1   :  { %12 = vsyncpa [#allocation4], 0  ;;  %s21_s23 = sshll.u32 %s1265_s2, 4  ;;  %s930_s24 = smov [#allocation2]   ;;  %s22_s23 = int_to_ptr.hbm [resolvable:$true] %s21_s23 }
   0x2   :  { %s23_s25 = sshll.u32 %s930_s24, 4  ;;  %s931_s26 = smov 64   ;;  %s24_s25 = int_to_ptr.vmem [resolvable:$true] %s23_s25 }
   0x3   :  { %s932_s27 = smov 4  }
   0x4   :  { %29 = dma.hbm_to_vmem [thread:$0]  %s22_s23, 1024, %s24_s25, [#allocation3], %s931_s26, %s931_s26, %s932_s27  }
   0x5   :  { %926 = dma.done.wait [#allocation3], 1024  }
   0x6   :  { %927 = vsyncadd [#allocation3], 4294966272  ;;  %v933_v0 = vmov 0   ;;  %v980_v1 = vld [vmem:[%s1263_s0] sm:$0xff]  ;;  %v985_v2 = vld [vmem:[%s1264_s1 + $0x38] sm:$0xff]  ;;  %v934_v19 = vmov 1   ;;  %v74_v21 = vlaneseq }
   0x7   :  { %866 = vset.pattern.permute.xlu0 %v933_v0  ;;  %v990_v3 = vld [vmem:[%s1264_s1 + $0x78] sm:$0xff]  ;;  %185 = vmatpush.bf16.msra.mxu0 %v985_v2  ;;  %v998_v4 = vld [vmem:[%s1264_s1 + $0x30] sm:$0xff]  ;;  %v1011_v6 = vld [vmem:[%s1264_s1 + $0x28] sm:$0xff]  ;;  %v935_v25 = vmov 1.0|1.0   ;;  %v936_v27 = vmov 2  }
   0x8   :  { %79 = vperm.xlu0 %866, %v980_v1   ;;  %198 = vmatpush.bf16.msra.mxu1 %v990_v3  ;;  %v1003_v5 = vld [vmem:[%s1264_s1 + $0x70] sm:$0xff]  ;;  %v1016_v7 = vld [vmem:[%s1264_s1 + $0x68] sm:$0xff]  ;;  %v1024_v8 = vld [vmem:[%s1264_s1 + $0x20] sm:$0xff]  ;;  %v1108_v22 = vand.u32 127, %v74_v21  ;;  %vm228_vm6 = vcmask 261120   ;;  %v937_v40 = vmov 3  }
   0x9   :  { %260 = vmatpush.bf16.msra.mxu3 %v985_v2  ;;  %v1029_v9 = vld [vmem:[%s1264_s1 + $0x60] sm:$0xff]  ;;  %v1037_v10 = vld [vmem:[%s1264_s1 + $0x18] sm:$0xff]  ;;  %v1050_v12 = vld [vmem:[%s1264_s1 + $0x10] sm:$0xff]  ;;  %868 = vset.pattern.permute.xlu1 %v936_v27  ;;  %s619_s22 = sshll.u32 %s1269_s6, 4  ;;  %s620_s22 = int_to_ptr.hbm [resolvable:$true] %s619_s22 }
   0xa   :  { %v1042_v11 = vld [vmem:[%s1264_s1 + $0x58] sm:$0xff]  ;;  %v1055_v13 = vld [vmem:[%s1264_s1 + $0x50] sm:$0xff]  ;;  %v1063_v14 = vld [vmem:[%s1264_s1 + $0x8] sm:$0xff]  ;;  %v1112_v23 = vadd.s32 128, %v1108_v22  ;;  %322 = vperm.xlu1 %868, %v980_v1  }
   0xb   :  { %186 = vmatpush.bf16.msra.mxu0 %v998_v4  ;;  %v1068_v15 = vld [vmem:[%s1264_s1 + $0x48] sm:$0xff]  ;;  %v1076_v16 = vld [vmem:[%s1264_s1] sm:$0xff]  ;;  %v836_v34 = vld [vmem:[#allocation2 + $0x18] sm:$0xff] }
   0xc   :  { %199 = vmatpush.bf16.msra.mxu1 %v1003_v5  ;;  %v1081_v17 = vld [vmem:[%s1264_s1 + $0x40] sm:$0xff]  ;;  %v834_v18 = vld [vmem:[#allocation2 + $0x8] sm:$0xff]  ;;  %v835_v35 = vld [vmem:[#allocation2 + $0x10] sm:$0xff] }
   0xd   :  { %261 = vmatpush.bf16.msra.mxu3 %v998_v4  ;;  %238 = vmatpush.bf16.msra.mxu2 %v834_v18  ;;  %v833_v20 = vld [vmem:[#allocation2] sm:$0xff]  ;;  %v838_v46 = vld [vmem:[#allocation2 + $0x28] sm:$0xff]  ;;  %v840_v61 = vld [vmem:[#allocation2 + $0x38] sm:$0xff] }
   0xe   :  { %v837_v47 = vld [vmem:[#allocation2 + $0x20] sm:$0xff]  ;;  %v839_v62 = vld [vmem:[#allocation2 + $0x30] sm:$0xff]  ;;  %v848_v27 = vld [vmem:[%s1267_s4 + $0x34] sm:$0xf0] }
   0xf   :  { %187 = vmatpush.bf16.msra.mxu0 %v1011_v6  ;;  %v871_v51 = vld [vmem:[%s1266_s3] ss:$0 sm:$0xff]  ;;  %v811_v0 = vld [vmem:[%s1267_s4 + $0x70] sm:$0xf] }
  0x10   :  { %200 = vmatpush.bf16.msra.mxu1 %v1016_v7  ;;  %867 = vset.pattern.permute.xlu0 %v934_v19  ;;  %v787_v19 = vld [vmem:[%s1267_s4 + $0x40] sm:$0xf] }
  0x11   :  { %262 = vmatpush.bf16.msra.mxu3 %v1011_v6  ;;  %250 = vperm.xlu0 %867, %v980_v1  }
  0x12   :  { %239 = vmatpush.bf16.msra.mxu2 %v833_v20  ;;  %869 = vset.pattern.permute.xlu1 %v937_v40  ;;  %v850_v20 = vld [vmem:[%s1267_s4 + $0x44] sm:$0xf0] }
  0x13   :  { %188 = vmatpush.bf16.msra.mxu0 %v1024_v8  ;;  %394 = vperm.xlu1 %869, %v980_v1   ;;  %v856_v1 = vld [vmem:[%s1267_s4 + $0x74] sm:$0xf0] }
  0x14   :  { %201 = vmatpush.bf16.msra.mxu1 %v1029_v9 }
  0x15   :  { %263 = vmatpush.bf16.msra.mxu3 %v1024_v8 }
  0x16   :  { %273 = vmatpush.bf16.msrb.mxu2 %v990_v3 }
  0x17   :  { %189 = vmatpush.bf16.msra.mxu0 %v1037_v10 }
  0x18   :  { %202 = vmatpush.bf16.msra.mxu1 %v1042_v11 }
  0x19   :  { %264 = vmatpush.bf16.msra.mxu3 %v1037_v10  ;;  %870 = vset.pattern.permute.xlu0 %v937_v40  ;;  %v844_v40 = vld [vmem:[%s1267_s4 + $0x14] sm:$0xf0] }
  0x1a   :  { %274 = vmatpush.bf16.msrb.mxu2 %v1003_v5 }
  0x1b   :  { %190 = vmatpush.bf16.msra.mxu0 %v1050_v12 }
  0x1c   :  { %203 = vmatpush.bf16.msra.mxu1 %v1055_v13 }
  0x1d   :  { %265 = vmatpush.bf16.msra.mxu3 %v1050_v12 }
  0x1e   :  { %275 = vmatpush.bf16.msrb.mxu2 %v1016_v7 }
  0x1f   :  { %191 = vmatpush.bf16.msra.mxu0 %v1063_v14 }
  0x20   :  { %204 = vmatpush.bf16.msra.mxu1 %v1068_v15 }
  0x21   :  { %266 = vmatpush.bf16.msra.mxu3 %v1063_v14 }
  0x22   :  { %276 = vmatpush.bf16.msrb.mxu2 %v1029_v9 }
  0x23   :  { %192 = vmatpush.bf16.msra.mxu0 %v1076_v16 }
  0x24   :  { %205 = vmatpush.bf16.msra.mxu1 %v1081_v17 }
  0x25   :  { %267 = vmatpush.bf16.msra.mxu3 %v1076_v16 }
  0x26   :  { %277 = vmatpush.bf16.msrb.mxu2 %v1042_v11 }
  0x27   :  { %404 = vmatpush.bf16.msrb.mxu0 %v985_v2 }
  0x28   :  { %313 = vmatpush.bf16.msrb.mxu1 %v836_v34  ;;  %v846_v34 = vld [vmem:[%s1267_s4 + $0x24] sm:$0xf0] }
  0x29   :  { %345 = vmatpush.bf16.msrb.mxu3 %v990_v3 }
  0x2a   :  { %278 = vmatpush.bf16.msrb.mxu2 %v1055_v13 }
  0x2b   :  { %405 = vmatpush.bf16.msrb.mxu0 %v998_v4 }
  0x2c   :  { %314 = vmatpush.bf16.msrb.mxu1 %v835_v35  ;;  %v845_v35 = vld [vmem:[%s1267_s4 + $0x24] sm:$0xf] }
  0x2d   :  { %346 = vmatpush.bf16.msrb.mxu3 %v1003_v5 }
  0x2e   :  { %279 = vmatpush.bf16.msrb.mxu2 %v1068_v15 }
  0x2f   :  { %406 = vmatpush.bf16.msrb.mxu0 %v1011_v6 }
  0x31   :  { %347 = vmatpush.bf16.msrb.mxu3 %v1016_v7 }
  0x32   :  { %280 = vmatpush.bf16.msrb.mxu2 %v1081_v17 }
  0x33   :  { %407 = vmatpush.bf16.msrb.mxu0 %v1024_v8 }
  0x35   :  { %348 = vmatpush.bf16.msrb.mxu3 %v1029_v9 }
  0x37   :  { %408 = vmatpush.bf16.msrb.mxu0 %v1037_v10 }
  0x39   :  { %349 = vmatpush.bf16.msrb.mxu3 %v1042_v11 }
  0x3b   :  { %409 = vmatpush.bf16.msrb.mxu0 %v1050_v12 }
  0x3d   :  { %350 = vmatpush.bf16.msrb.mxu3 %v1055_v13 }
  0x3f   :  { %410 = vmatpush.bf16.msrb.mxu0 %v1063_v14 }
  0x41   :  { %351 = vmatpush.bf16.msrb.mxu3 %v1068_v15 }
  0x43   :  { %411 = vmatpush.bf16.msrb.mxu0 %v1076_v16 }
  0x45   :  { %352 = vmatpush.bf16.msrb.mxu3 %v1081_v17 }
  0x7a   :  { %v80_v24 = vpop.permute.xlu0 %79 }
  0x7b   :  { %vm81_vm0 = vcmp.eq.s32.totalorder %v80_v24, %v1108_v22  ;;  %vm82_vm1 = vcmp.eq.s32.totalorder %v80_v24, %v1112_v23  ;;  %v788_v24 = vor.u32 %v850_v20, %v787_v19 }
  0x7c   :  { %vm695_vm2 = vmpackc.low %vm81_vm0, %vm81_vm0  ;;  %v323_v38 = vpop.permute.xlu1 %322 }
  0x7d   :  { %696 = vmatmul.msk.bf16.vlgmr.msra.gmra.mxu0 %vm695_vm2, %v935_v25  ;;  %vm697_vm3 = vmpackc.low %vm82_vm1, %vm82_vm1  ;;  %vm325_vm9 = vcmp.eq.s32.totalorder %v323_v38, %v1112_v23  ;;  %vm324_vm11 = vcmp.eq.s32.totalorder %v323_v38, %v1108_v22 }
  0x7e   :  { %698 = vmatmul.msk.bf16.vlgmr.msra.gmra.mxu1 %vm697_vm3, %v935_v25  ;;  %vm727_vm10 = vmpackc.low %vm325_vm9, %vm325_vm9 }
  0x7f   :  { %332 = vmatpush.bf16.msra.mxu1 %v985_v2  ;;  %vm725_vm12 = vmpackc.low %vm324_vm11, %vm324_vm11  ;;  %v855_v2 = vld [vmem:[%s1267_s4 + $0x74] sm:$0xf] }
  0x83   :  { %v251_v26 = vpop.permute.xlu0 %250  ;;  %333 = vmatpush.bf16.msra.mxu1 %v998_v4  ;;  %v813_v4 = vld [vmem:[%s1267_s4 + $0x78] sm:$0xf0] }
  0x84   :  { %vm252_vm4 = vcmp.eq.s32.totalorder %v251_v26, %v1108_v22  ;;  %vm253_vm7 = vcmp.eq.s32.totalorder %v251_v26, %v1112_v23  ;;  %v779_v26 = vld [vmem:[%s1267_s4 + $0x30] sm:$0xf] }
  0x85   :  { %vm710_vm5 = vmpackc.low %vm252_vm4, %vm252_vm4  ;;  %v395_v50 = vpop.permute.xlu1 %394 }
  0x86   :  { %711 = vmatmul.msk.bf16.vlgmr.msra.gmra.mxu3 %vm710_vm5, %v935_v25  ;;  %vm712_vm8 = vmpackc.low %vm253_vm7, %vm253_vm7  ;;  %vm396_vm13 = vcmp.eq.s32.totalorder %v395_v50, %v1108_v22  ;;  %vm397_vm15 = vcmp.eq.s32.totalorder %v395_v50, %v1112_v23  ;;  %v849_v22 = vld [vmem:[%s1267_s4 + $0x44] sm:$0xf]  ;;  %v789_v23 = vld [vmem:[%s1267_s4 + $0x48] sm:$0xf0] }
  0x87   :  { %334 = vmatpush.bf16.msra.mxu1 %v1011_v6  ;;  %vm740_vm14 = vmpackc.low %vm396_vm13, %vm396_vm13  ;;  %v854_v6 = vld [vmem:[%s1267_s4 + $0x64] sm:$0xf0] }
  0x88   :  { %vm742_vm0 = vmpackc.low %vm397_vm15, %vm397_vm15  ;;  %v842_v50 = vld [vmem:[%s1267_s4 + $0x4] sm:$0xf0] }
  0x8b   :  { %335 = vmatpush.bf16.msra.mxu1 %v1024_v8  ;;  %v853_v8 = vld [vmem:[%s1267_s4 + $0x64] sm:$0xf] }
  0x8d   :  { %741 = vmatmul.msk.bf16.vlgmr.msrb.gmra.mxu0 %vm740_vm14, %v935_v25 }
  0x8f   :  { %336 = vmatpush.bf16.msra.mxu1 %v1037_v10 }
  0x93   :  { %337 = vmatpush.bf16.msra.mxu1 %v1050_v12  ;;  %v795_v12 = vld [vmem:[%s1267_s4 + $0x50] sm:$0xf] }
  0x96   :  { %728 = vmatmul.msk.bf16.vlgmr.msrb.gmra.mxu3 %vm727_vm10, %v935_v25 }
  0x97   :  { %338 = vmatpush.bf16.msra.mxu1 %v1063_v14  ;;  %v851_v14 = vld [vmem:[%s1267_s4 + $0x54] sm:$0xf] }
  0x9b   :  { %339 = vmatpush.bf16.msra.mxu1 %v1076_v16 }
  0xfa   :  { %v194_v28 = vpop.f32.mrf.mxu0 }
  0xfb   :  { %v207_v29 = vpop.f32.mrf.mxu1 }
  0xfc   :  { %v208_v30 = vadd.f32 %v207_v29, %v194_v28  ;;  %v847_v28 = vld [vmem:[%s1267_s4 + $0x34] sm:$0xf]  ;;  %v781_v29 = vld [vmem:[%s1267_s4 + $0x38] sm:$0xf0] }
  0xfe   :  { %v211_v31 = vpack.c.bf16 %v208_v30, %v208_v30  ;;  %v780_v30 = vor.u32 %v848_v27, %v779_v26 }
 0x100   :  { %707 = vmatmul.msk.bf16.vlgmr.msra.gmra.mxu2 %vm228_vm6, %v211_v31 }
 0x101   :  { %385 = vmatpush.bf16.msra.mxu2 %v838_v46 }
 0x102   :  { %v196_v32 = vpop.f32.mrf.mxu0 }
 0x103   :  { %v209_v33 = vpop.f32.mrf.mxu1  ;;  %v784_v32 = vor.u32 %v847_v28, %v781_v29 }
 0x104   :  { %v771_v33 = vld [vmem:[%s1267_s4 + $0x20] sm:$0xf] }
 0x105   :  { %386 = vmatpush.bf16.msra.mxu2 %v837_v47 }
 0x109   :  { %v269_v36 = vpop.f32.mrf.mxu3 }
 0x10a   :  { %v1157_v60 = vpop.f32.mrf.mxu0 }
 0x110   :  { %713 = vmatmul.msk.bf16.vlgmr.msrb.gmra.mxu2 %vm712_vm8, %v935_v25 }
 0x111   :  { %v271_v37 = vpop.f32.mrf.mxu3  ;;  %417 = vmatpush.bf16.msrb.mxu2 %v990_v3  ;;  %v812_v3 = vor.u32 %v856_v1, %v811_v0 }
 0x112   :  { %v415_v63 = vpop.f32.mrf.mxu0  ;;  %v772_v37 = vor.u32 %v846_v34, %v771_v33 }
 0x113   :  { %568 = vmatpush.bf16.msra.mxu3 %v812_v3 }
 0x115   :  { %418 = vmatpush.bf16.msrb.mxu2 %v1003_v5  ;;  %v803_v5 = vld [vmem:[%s1267_s4 + $0x60] sm:$0xf] }
 0x116   :  { %v804_v10 = vor.u32 %v854_v6, %v803_v5 }
 0x118   :  { %569 = vmatpush.bf16.msra.mxu3 %v804_v10 }
 0x119   :  { %v354_v48 = vpop.f32.mrf.mxu3  ;;  %419 = vmatpush.bf16.msrb.mxu2 %v1016_v7  ;;  %v816_v7 = vor.u32 %v855_v2, %v813_v4 }
 0x11b   :  { %581 = vmatpush.bf16.msra.mxu0 %v816_v7 }
 0x11d   :  { %420 = vmatpush.bf16.msrb.mxu2 %v1029_v9  ;;  %v805_v9 = vld [vmem:[%s1267_s4 + $0x68] sm:$0xf0] }
 0x121   :  { %v356_v49 = vpop.f32.mrf.mxu3  ;;  %421 = vmatpush.bf16.msrb.mxu2 %v1042_v11  ;;  %v808_v11 = vor.u32 %v853_v8, %v805_v9 }
 0x122   :  { %v755_v49 = vld [vmem:[%s1267_s4] sm:$0xf] }
 0x123   :  { %582 = vmatpush.bf16.msra.mxu0 %v808_v11 }
 0x125   :  { %422 = vmatpush.bf16.msrb.mxu2 %v1055_v13  ;;  %v852_v13 = vld [vmem:[%s1267_s4 + $0x54] sm:$0xf0] }
 0x126   :  { %v796_v16 = vor.u32 %v852_v13, %v795_v12 }
 0x128   :  { %570 = vmatpush.bf16.msra.mxu3 %v796_v16 }
 0x129   :  { %423 = vmatpush.bf16.msrb.mxu2 %v1068_v15  ;;  %v797_v15 = vld [vmem:[%s1267_s4 + $0x58] sm:$0xf0] }
 0x12a   :  { %v800_v18 = vor.u32 %v851_v14, %v797_v15 }
 0x12c   :  { %583 = vmatpush.bf16.msra.mxu0 %v800_v18  ;;  %571 = vmatpush.bf16.msra.mxu3 %v788_v24 }
 0x12d   :  { %424 = vmatpush.bf16.msrb.mxu2 %v1081_v17 }
 0x130   :  { %572 = vmatpush.bf16.msra.mxu3 %v780_v30 }
 0x134   :  { %573 = vmatpush.bf16.msra.mxu3 %v772_v37 }
 0x183   :  { %v241_v39 = vpop.f32.mrf.mxu2 }
 0x184   :  { %v248_v52 = vadd.f32 %v871_v51, %v241_v39  ;;  %v763_v39 = vld [vmem:[%s1267_s4 + $0x10] sm:$0xf]  ;;  %v841_v51 = vld [vmem:[%s1267_s4 + $0x4] sm:$0xf] }
 0x18b   :  { %v243_v41 = vpop.f32.mrf.mxu2 }
 0x18c   :  { %v843_v41 = vld [vmem:[%s1267_s4 + $0x14] sm:$0xf] }
 0x193   :  { %v282_v42 = vpop.f32.mrf.mxu2 }
 0x194   :  { %v283_v43 = vadd.f32 %v282_v42, %v269_v36  ;;  %v773_v36 = vld [vmem:[%s1267_s4 + $0x28] sm:$0xf0]  ;;  %v765_v42 = vld [vmem:[%s1267_s4 + $0x18] sm:$0xf0] }
 0x195   :  { %v776_v38 = vor.u32 %v845_v35, %v773_v36 }
 0x196   :  { %v286_v44 = vpack.c.bf16 %v283_v43, %v283_v43  ;;  %v764_v43 = vor.u32 %v844_v40, %v763_v39 }
 0x198   :  { %722 = vmatmul.msk.bf16.vlgmr.msrb.gmra.mxu1 %vm228_vm6, %v286_v44  ;;  %574 = vmatpush.bf16.msra.mxu3 %v764_v43 }
 0x199   :  { %457 = vmatpush.bf16.msrb.mxu1 %v840_v61 }
 0x19b   :  { %v284_v45 = vpop.f32.mrf.mxu2 }
 0x19c   :  { %v768_v45 = vor.u32 %v843_v41, %v765_v42 }
 0x19d   :  { %458 = vmatpush.bf16.msrb.mxu1 %v839_v62 }
 0x1a8   :  { %726 = vmatmul.msk.bf16.vlgmr.msra.gmra.mxu1 %vm725_vm12, %v935_v25 }
 0x215   :  { %v316_v53 = vpop.f32.mrf.mxu1 }
 0x216   :  { %v320_v54 = vadd.f32 %v316_v53, %v248_v52  ;;  %v756_v52 = vor.u32 %v842_v50, %v755_v49  ;;  %v757_v53 = vld [vmem:[%s1267_s4 + $0x8] sm:$0xf0]  ;;  %s938_s4 = smov [#allocation5]  }
 0x218   :  { %575 = vmatpush.bf16.msra.mxu3 %v756_v52 }
 0x21d   :  { %v318_v55 = vpop.f32.mrf.mxu1 }
 0x225   :  { %v341_v56 = vpop.f32.mrf.mxu1 }
 0x226   :  { %v355_v57 = vadd.f32 %v354_v48, %v341_v56 }
 0x228   :  { %v358_v58 = vpack.c.bf16 %v355_v57, %v355_v57 }
 0x22a   :  { %737 = vmatmul.msk.bf16.vlgmr.msra.gmra.mxu2 %vm228_vm6, %v358_v58 }
 0x22d   :  { %v343_v59 = vpop.f32.mrf.mxu1 }
 0x22e   :  { %v482_v59 = vld [vmem:[%s1268_s5] sm:$0x3]  ;;  %s617_s5 = sshll.u32 %s938_s4, 4  ;;  %s618_s5 = int_to_ptr.vmem [resolvable:$true] %s617_s5 }
 0x22f   :  { %v485_v61 = vperm.slane %v482_v59, 1  ;;  %v484_v62 = vperm.slane %v482_v59, 0 }
 0x23a   :  { %743 = vmatmul.msk.bf16.vlgmr.msrb.gmra.mxu2 %vm742_vm0, %v935_v25  ;;  %v792_v25 = vor.u32 %v849_v22, %v789_v23 }
 0x23c   :  { %584 = vmatpush.bf16.msra.mxu0 %v792_v25 }
 0x240   :  { %585 = vmatpush.bf16.msra.mxu0 %v784_v32 }
 0x244   :  { %586 = vmatpush.bf16.msra.mxu0 %v776_v38 }
 0x248   :  { %587 = vmatpush.bf16.msra.mxu0 %v768_v45 }
 0x2ad   :  { %v388_v17 = vpop.f32.mrf.mxu2 }
 0x2ae   :  { %v392_v21 = vadd.f32 %v388_v17, %v320_v54  ;;  %v760_v54 = vor.u32 %v841_v51, %v757_v53 }
 0x2b0   :  { %588 = vmatpush.bf16.msra.mxu0 %v760_v54 }
 0x2b5   :  { %v390_v31 = vpop.f32.mrf.mxu2 }
 0x2bd   :  { %v426_v44 = vpop.f32.mrf.mxu2 }
 0x2be   :  { %v427_v46 = vadd.f32 %v426_v44, %v1157_v60 }
 0x2c0   :  { %v430_v47 = vpack.c.bf16 %v427_v46, %v427_v46 }
 0x2c2   :  { %752 = vmatmul.msk.bf16.vlgmr.msrb.gmra.mxu1 %vm228_vm6, %v430_v47 }
 0x2c5   :  { %v428_v48 = vpop.f32.mrf.mxu2 }
 0x33f   :  { %v460_v55 = vpop.f32.mrf.mxu1 }
 0x340   :  { %v464_v56 = vadd.f32 %v460_v55, %v392_v21 }
 0x342   :  { %v465_v57 = vpack.c.bf16 %v464_v56, %v464_v56 }
 0x344   :  { %576 = vmatmul.bf16.vlgmr.msra.gmra.mxu3 %v465_v57  ;;  %589 = vmatmul.bf16.vlgmr.msra.gmra.mxu0 %v465_v57 }
 0x347   :  { %v462_v58 = vpop.f32.mrf.mxu1 }
 0x3c1   :  { %v590_v60 = vpop.f32.mrf.mxu0 }
 0x3c2   :  { %v591_v0 = vadd.f32 %v590_v60, %v485_v61 }
 0x3c7   :  { %v577_v63 = vpop.f32.mrf.mxu3 }
 0x3c8   :  { %v578_v1 = vadd.f32 %v577_v63, %v484_v62 }
 0x3c9   :  { %v592_v2 = vpop.f32.mrf.mxu0 }
 0x3ca   :  { %v594_v3 = vmax.f32 %v578_v1, %v591_v0 }
 0x3cc   :  { %595 = vmax.xlane.f32.xlu2 %v594_v3 }
 0x3cf   :  { %v579_v4 = vpop.f32.mrf.mxu3 }
 0x43f   :  { %v596_v5 = vpop.xlane.xlu2 %595 }
 0x440   :  { %v597_v6 = vsub.f32 %v578_v1, %v596_v5  ;;  %v598_v7 = vsub.f32 %v591_v0, %v596_v5 }
 0x442   :  { %v599_v8 = vmul.f32 1.442695, %v597_v6  ;;  %v601_v9 = vmul.f32 1.442695, %v598_v7 }
 0x444   :  { %872 = vpow2.f32 %v599_v8 }
 0x445   :  { %874 = vpow2.f32 %v601_v9 }
 0x44a   :  { %v873_v10 = vpop.eup %872 }
 0x44b   :  { %v875_v11 = vpop.eup %874 }
 0x44c   :  { %v603_v12 = vadd.f32 %v875_v11, %v873_v10 }
 0x44e   :  { %604 = vadd.xlane.f32.xlu2 %v603_v12 }
 0x4c1   :  { %v605_v13 = vpop.xlane.xlu2 %604 }
 0x4c2   :  { %876 = vlog2.f32 %v605_v13 }
 0x4c8   :  { %v877_v14 = vpop.eup %876 }
 0x4c9   :  { %v607_v15 = vmul.f32 0.6931472, %v877_v14 }
 0x4cb   :  { %v608_v16 = vsub.f32 %v597_v6, %v607_v15  ;;  %v609_v17 = vsub.f32 %v598_v7, %v607_v15 }
 0x4cd   :  { %610 = vst [vmem:[#allocation5] sm:$0xff] %v608_v16 }
 0x4ce   :  { %611 = vst [vmem:[#allocation5 + $0x8] sm:$0xff] %v609_v17 }
 0x4cf   :  { %622 = dma.vmem_to_hbm [thread:$0]  %s618_s5, 256, %s620_s22, [#allocation4]  }
 0x4d0   :  { %928 = dma.done.wait [#allocation4], 256  }
 0x4d1   :  { %929 = vsyncadd [#allocation4], 4294967040 }
 0x4d2   :  { %627 = vsyncpa [#allocation3], 1 }
 0x4d3   :  { %628 = vsyncpa [#allocation4], 1 }

</bundles_post_ra>
